<compile_context>
chip_gen: v5e
topology: v5e:2x2
jax: 0.10.0
libtpu: 0.0.40
codegen_flags: <defaults>
</compile_context>

<pallas_src>
import functools

import jax
import jax.numpy as jnp
from jax.experimental import pallas as pl
from jax.experimental.pallas import tpu as pltpu


# --------------------------------------------------------------------------- #
# Kernels
# --------------------------------------------------------------------------- #
def _ssam_kernel(x_ref, xc_ref, yc_ref, out_ref):
    """Deferred-normalization spatial soft-argmax over one (TN, L) row tile.

    The last grid block may contain padded (uninitialized) rows; this is benign
    because every row is reduced independently along L only and the padded
    output rows are masked out of the writeback.  (A future L-axis /
    online-softmax refactor must NOT accumulate across those rows.)
    """
    x = x_ref[...].astype(jnp.float32)                        # (TN, L)
    m = jnp.max(x, axis=-1, keepdims=True)                    # (TN, 1)
    e = jnp.exp(x - m)                                        # (TN, L)  EUP
    s0 = jnp.sum(e, axis=-1, keepdims=True)                   # (TN, 1)
    sx = jnp.sum(e * xc_ref[0:1, :], axis=-1, keepdims=True)  # (TN, 1)
    sy = jnp.sum(e * yc_ref[0:1, :], axis=-1, keepdims=True)  # (TN, 1)
    inv = pl.reciprocal(s0)                                   # exact; only (TN,1)
    out_ref[:, 0:1] = (sx * inv).astype(out_ref.dtype)
    out_ref[:, 1:2] = (sy * inv).astype(out_ref.dtype)


def _ssam_kernel_mxu(x_ref, w_ref, out_ref):
    """v7x-oriented variant: the coordinate-weighted sums go through one bf16
    MXU pass (f32 accumulation) against a static (L, 128) weight whose first
    two columns are [xc, yc]; the denominator s0 stays as an exact f32 VPU
    reduction.  Same padded-row caveat as _ssam_kernel."""
    x = x_ref[...].astype(jnp.float32)                        # (TN, L)
    m = jnp.max(x, axis=-1, keepdims=True)
    e = jnp.exp(x - m)                                        # (TN, L) f32
    s0 = jnp.sum(e, axis=-1, keepdims=True)                   # (TN, 1) exact
    sums = jnp.dot(e.astype(jnp.bfloat16), w_ref[...],
                   preferred_element_type=jnp.float32)        # (TN, 128)
    inv = pl.reciprocal(s0)
    out_ref[:, 0:1] = (sums[:, 0:1] * inv).astype(out_ref.dtype)
    out_ref[:, 1:2] = (sums[:, 1:2] * inv).astype(out_ref.dtype)


# --------------------------------------------------------------------------- #
# Host-side helpers
# --------------------------------------------------------------------------- #
def _coord_rows(h, w, normalize):
    """Reproduce the (quirky) torch meshgrid flattening of the reference module."""
    if normalize:
        xs = jnp.linspace(-1.0, 1.0, w, dtype=jnp.float32)    # length w
        ys = jnp.linspace(-1.0, 1.0, h, dtype=jnp.float32)    # length h
    else:
        xs = jnp.arange(w, dtype=jnp.float32)
        ys = jnp.arange(h, dtype=jnp.float32)
    k = jnp.arange(h * w)
    xc_flat = xs[k // h]          # xc.flatten() of meshgrid(xs, ys) -> (w*h,)
    yc_flat = ys[k % h]
    return xc_flat[None, :], yc_flat[None, :]                  # (1, L) each


def _round_up(v, m):
    return ((v + m - 1) // m) * m


def _cdiv(a, b):
    return -(-a // b)


def _pick_row_tile(n, l, itemsize):
    """Largest sublane-multiple row tile whose full per-step working set
    (double-buffered input window + in-kernel f32 upcast + exp intermediate)
    fits a ~24 MiB budget, with a byte-based floor so medium N still yields
    >= 8 grid steps (megacore on v7x + a busy DMA pipeline).

    For absurdly large L (H*W in the millions) an L-axis (online-softmax) grid
    would be needed; not required for this module's realistic feature maps.
    """
    working_budget = 24 << 20                     # bytes per grid step, all gens
    bytes_per_row = l * (2 * itemsize + 2 * 4)    # 2x input bufs + f32 x + exp
    tn = max(8, working_budget // bytes_per_row)
    tn = min(tn, 1024)                            # diminishing returns past ~512
    # Prefer >= 8 grid steps, but never shrink the input block below ~1 MiB:
    # DMA efficiency tracks block bytes, not row count.
    min_rows_for_bytes = _round_up(max(8, _cdiv(1 << 20, l * itemsize)), 8)
    rows_for_8_steps = _round_up(_cdiv(n, 8), 8)
    tn = min(tn, max(min_rows_for_bytes, rows_for_8_steps))
    tn = min(tn, _round_up(n, 8))                 # last block may be row-padded
    return max(8, (tn // 8) * 8)


def _vmem_limit_bytes(tn, l, in_itemsize, extra_input_bytes):
    need = 2 * tn * l * in_itemsize               # double-buffered x window
    need += 2 * tn * l * 4                        # f32 upcast + exp() intermediates
    need += extra_input_bytes                     # coord rows / MXU weight / bf16 e
    need += 2 * tn * 2 * 4                        # double-buffered (tn, 2) output
    need += 4 << 20                               # internal scratch / spill headroom
    # Raise above the small default scoped limits (16 MiB on v5e), but stay
    # comfortably under v7x's 64 MiB physical VMEM per TensorCore.
    return int(min(max(need, 16 << 20), 48 << 20))


def _const_block_spec(block_shape):
    """Constant-index block (fetched once): single-buffer it to save VMEM."""
    try:
        return pl.BlockSpec(block_shape, lambda i: (0, 0),
                            pipeline_mode=pl.Buffered(1))
    except TypeError:  # older jax without pipeline_mode: fall back to default
        return pl.BlockSpec(block_shape, lambda i: (0, 0))


# --------------------------------------------------------------------------- #
# Public entry point
# --------------------------------------------------------------------------- #
@functools.partial(jax.jit, static_argnames=("normalize", "use_mxu"))
def spatial_soft_argmax(x, normalize=True, use_mxu=False):
    """x: (B, C, H, W)  ->  (B, 2, C), matching the PyTorch module.

    The kernel is HBM-bound on v5e/v6e/v7x: feeding `x` as bfloat16 is the
    recommended caller dtype (halves read traffic; accumulation is f32 either
    way).  `use_mxu=True` selects the v7x-oriented single-bf16-pass MXU
    reduction for the coordinate-weighted sums (leave False on v5e/v6e).
    """
    assert x.ndim == 4, "Expecting a tensor of shape (B, C, H, W)."
    b, c, h, w = x.shape
    n, l = b * c, h * w

    x_flat = x.reshape(n, l)
    itemsize = x_flat.dtype.itemsize
    tn = _pick_row_tile(n, l, itemsize)
    grid = (pl.cdiv(n, tn),)

    xc_row, yc_row = _coord_rows(h, w, normalize)

    if use_mxu:
        # Static (L, 128) bf16 weight: columns [xc | yc | 0 ... 0].
        w_mat = jnp.concatenate(
            [xc_row.T, yc_row.T, jnp.zeros((l, 126), jnp.float32)],
            axis=1).astype(jnp.bfloat16)
        kernel = _ssam_kernel_mxu
        extra_inputs = (w_mat,)
        extra_specs = [_const_block_spec((l, 128))]
        extra_bytes = 2 * l * 128 * 2 + tn * l * 2      # weight (+margin) + bf16 e
    else:
        kernel = _ssam_kernel
        # Pre-replicate the coord rows to (8, L): natively laid-out sublane tile,
        # fetched once (constant block index) and single-buffered.
        xc_rep = jnp.tile(xc_row, (8, 1))
        yc_rep = jnp.tile(yc_row, (8, 1))
        extra_inputs = (xc_rep, yc_rep)
        extra_specs = [_const_block_spec((8, l)), _const_block_spec((8, l))]
        extra_bytes = 2 * 2 * 8 * l * 4                  # conservative (2 bufs each)

    out = pl.pallas_call(
        kernel,
        out_shape=jax.ShapeDtypeStruct((n, 2), jnp.float32),
        grid_spec=pltpu.PrefetchScalarGridSpec(
            num_scalar_prefetch=0,
            grid=grid,
            in_specs=[pl.BlockSpec((tn, l), lambda i: (i, 0))] + extra_specs,
            out_specs=pl.BlockSpec((tn, 2), lambda i: (i, 0)),
        ),
        compiler_params=pltpu.CompilerParams(
            dimension_semantics=("parallel",),
            vmem_limit_bytes=_vmem_limit_bytes(tn, l, itemsize, extra_bytes),
        ),
    )(x_flat, *extra_inputs)

    # out[:, 0] = x_mean, out[:, 1] = y_mean, row order == (B, C) row-major.
    return jnp.transpose(out.reshape(b, c, 2), (0, 2, 1))     # (B, 2, C)


# --------------------------------------------------------------------------- #
# Pure-JAX reference (mirrors the PyTorch forward) and self-test
# --------------------------------------------------------------------------- #
def _reference_jax(x, normalize=True):
    b, c, h, w = x.shape
    sm = jax.nn.softmax(x.reshape(-1, h * w).astype(jnp.float32), axis=-1)
    xc_row, yc_row = _coord_rows(h, w, normalize)
    x_mean = jnp.sum(sm * xc_row, axis=1)
    y_mean = jnp.sum(sm * yc_row, axis=1)
    return jnp.stack((x_mean.reshape(b, c), y_mean.reshape(b, c)), axis=1)


if __name__ == "__main__":
    key = jax.random.PRNGKey(0)
    k1, k2 = jax.random.split(key)

    # Case 1: the module's canonical small shape, default (exact) VPU path.
    B, C, H, W = 2, 4, 16, 16
    x = jax.random.normal(k1, (B, C, H, W), dtype=jnp.float32)
    out = jax.block_until_ready(spatial_soft_argmax(x, normalize=True))
    ref = _reference_jax(x, normalize=True)
    assert out.shape == (B, 2, C), out.shape
    assert jnp.allclose(out, ref, atol=1e-5, rtol=1e-4), (out, ref)

    # Case 1b: bf16 input (recommended mem-bound dtype); compare against the
    # f32 reference computed from the same bf16-rounded values.
    x_bf16 = x.astype(jnp.bfloat16)
    out_bf = jax.block_until_ready(spatial_soft_argmax(x_bf16, normalize=True))
    ref_bf = _reference_jax(x_bf16, normalize=True)
    assert jnp.allclose(out_bf, ref_bf, atol=1e-5, rtol=1e-4), (out_bf, ref_bf)

    # Case 1c: opt-in MXU reduction path (bf16 matmul pass -> looser tolerance).
    out_mxu = jax.block_until_ready(spatial_soft_argmax(x, normalize=True,
                                                        use_mxu=True))
    assert jnp.allclose(out_mxu, ref, atol=2e-2, rtol=2e-2), (out_mxu, ref)

    # Case 2: non-square map, row count that doesn't divide the tile (exercises
    # the coordinate quirk and last-block row padding), both normalize modes.
    B2, C2, H2, W2 = 3, 7, 12, 10
    x2 = jax.random.normal(k2, (B2, C2, H2, W2), dtype=jnp.float32)
    for norm in (True, False):
        out2 = jax.block_until_ready(spatial_soft_argmax(x2, normalize=norm))
        ref2 = _reference_jax(x2, normalize=norm)
        assert out2.shape == (B2, 2, C2), out2.shape
        assert jnp.allclose(out2, ref2, atol=1e-4, rtol=1e-4), (norm, out2, ref2)

    print("KERNEL_OK")
</pallas_src>

<mosaic_0001>
module attributes {stable_mosaic.version = 11 : i64} {
  func.func @_ssam_kernel(%arg0: i32, %arg1: memref<8x256xf32, #tpu.memory_space<vmem>>, %arg2: memref<8x256xf32, #tpu.memory_space<vmem>>, %arg3: memref<8x256xf32, #tpu.memory_space<vmem>>, %arg4: memref<8x2xf32, #tpu.memory_space<vmem>>) attributes {dimension_semantics = [#tpu.dimension_semantics<parallel>], iteration_bounds = array<i64: 1>, scalar_prefetch = 0 : i64, scratch_operands = 0 : i64, tpu.core_type = #tpu.core_type<tc>, window_params = [{transform_indices = @transform_0, window_bounds = array<i64: 8, 256>}, {pipeline_mode = #tpu.pipeline_mode<synchronous>, transform_indices = @transform_1, window_bounds = array<i64: 8, 256>}, {pipeline_mode = #tpu.pipeline_mode<synchronous>, transform_indices = @transform_2, window_bounds = array<i64: 8, 256>}, {transform_indices = @transform_3, window_bounds = array<i64: 8, 2>}]} {
    %c0 = arith.constant 0 : index
    %c0_0 = arith.constant 0 : index
    %0 = vector.load %arg1[%c0, %c0_0] : memref<8x256xf32, #tpu.memory_space<vmem>>, vector<8x256xf32>
    %cst = arith.constant dense<0xFF800000> : vector<8xf32>
    %1 = vector.multi_reduction <maximumf>, %0, %cst [1] : vector<8x256xf32> to vector<8xf32>
    %2 = vector.shape_cast %1 : vector<8xf32> to vector<8x1xf32>
    %3 = vector.broadcast %2 : vector<8x1xf32> to vector<8x256xf32>
    %4 = arith.subf %0, %3 : vector<8x256xf32>
    %5 = math.exp %4 : vector<8x256xf32>
    %cst_1 = arith.constant dense<0.000000e+00> : vector<8xf32>
    %6 = vector.multi_reduction <add>, %5, %cst_1 [1] : vector<8x256xf32> to vector<8xf32>
    %7 = vector.shape_cast %6 : vector<8xf32> to vector<8x1xf32>
    %c0_2 = arith.constant 0 : index
    %c0_3 = arith.constant 0 : index
    %8 = vector.load %arg2[%c0_2, %c0_3] : memref<8x256xf32, #tpu.memory_space<vmem>>, vector<1x256xf32>
    %9 = vector.broadcast %8 : vector<1x256xf32> to vector<8x256xf32>
    %10 = arith.mulf %5, %9 : vector<8x256xf32>
    %cst_4 = arith.constant dense<0.000000e+00> : vector<8xf32>
    %11 = vector.multi_reduction <add>, %10, %cst_4 [1] : vector<8x256xf32> to vector<8xf32>
    %12 = vector.shape_cast %11 : vector<8xf32> to vector<8x1xf32>
    %c0_5 = arith.constant 0 : index
    %c0_6 = arith.constant 0 : index
    %13 = vector.load %arg3[%c0_5, %c0_6] : memref<8x256xf32, #tpu.memory_space<vmem>>, vector<1x256xf32>
    %14 = vector.broadcast %13 : vector<1x256xf32> to vector<8x256xf32>
    %15 = arith.mulf %5, %14 : vector<8x256xf32>
    %cst_7 = arith.constant dense<0.000000e+00> : vector<8xf32>
    %16 = vector.multi_reduction <add>, %15, %cst_7 [1] : vector<8x256xf32> to vector<8xf32>
    %17 = vector.shape_cast %16 : vector<8xf32> to vector<8x1xf32>
    %18 = tpu.reciprocal %7 : vector<8x1xf32> -> vector<8x1xf32>
    %19 = arith.mulf %12, %18 : vector<8x1xf32>
    %c0_8 = arith.constant 0 : index
    %c0_9 = arith.constant 0 : index
    %20 = vector.load %arg4[%c0_8, %c0_9] : memref<8x2xf32, #tpu.memory_space<vmem>>, vector<8x1xf32>
    tpu.vector_store %arg4[%c0_8, %c0_9], %19 {strides = array<i32>} : memref<8x2xf32, #tpu.memory_space<vmem>>, vector<8x1xf32>,
    %21 = arith.mulf %17, %18 : vector<8x1xf32>
    %c0_10 = arith.constant 0 : index
    %c1 = arith.constant 1 : index
    %22 = vector.load %arg4[%c0_10, %c1] : memref<8x2xf32, #tpu.memory_space<vmem>>, vector<8x1xf32>
    tpu.vector_store %arg4[%c0_10, %c1], %21 {strides = array<i32>} : memref<8x2xf32, #tpu.memory_space<vmem>>, vector<8x1xf32>,
    return
  }
  func.func @transform_0(%arg0: i32) -> (i32, i32) {
    %c0_i32 = arith.constant 0 : i32
    %c0_i32_0 = arith.constant 0 : i32
    return %arg0, %c0_i32 : i32, i32
  }
  func.func @transform_1(%arg0: i32) -> (i32, i32) {
    %c0_i32 = arith.constant 0 : i32
    %c0_i32_0 = arith.constant 0 : i32
    %c0_i32_1 = arith.constant 0 : i32
    return %c0_i32, %c0_i32_0 : i32, i32
  }
  func.func @transform_2(%arg0: i32) -> (i32, i32) {
    %c0_i32 = arith.constant 0 : i32
    %c0_i32_0 = arith.constant 0 : i32
    %c0_i32_1 = arith.constant 0 : i32
    return %c0_i32, %c0_i32_0 : i32, i32
  }
  func.func @transform_3(%arg0: i32) -> (i32, i32) {
    %c0_i32 = arith.constant 0 : i32
    %c0_i32_0 = arith.constant 0 : i32
    return %arg0, %c0_i32 : i32, i32
  }
}

</mosaic_0001>

<bundles_post_ra>
// kernel: spatial_soft_argmax.1
= control target key start
LH: loop header
LB: loop body
LE: loop exit
PB: predicated region body
PF: predicated region fallthrough
CT: control target
= control target key end

     0   :  { %vm65_vm4 = vcmask 7168   ;;  %vm68_vm5 = vcmask 15368   ;;  %s118_s0 = inlined_call_operand.vmem [shape: f32[8,256], index: 0, kind: input, shape index: {}]   ;;  %s119_s1 = inlined_call_operand.vmem [shape: f32[8,256], index: 1, kind: input, shape index: {}]   ;;  %s120_s2 = inlined_call_operand.vmem [shape: f32[8,256], index: 2, kind: input, shape index: {}]   ;;  %s121_s3 = inlined_call_operand.vmem [shape: f32[8,2], index: 3, kind: output, shape index: {}]  }
   0x1   :  { %v14_v0 = vld [vmem:[%s118_s0] sm:$0xff]  ;;  %v15_v1 = vld [vmem:[%s118_s0 + $0x8] sm:$0xff] }
   0x2   :  { %v16_v2 = vmax.f32 %v14_v0, %v15_v1  ;;  %v28_v8 = vld [vmem:[%s119_s1] ss:$8 sm:$0x3] }
   0x3   :  { %v30_v9 = vperm.slane %v28_v8, 0  ;;  %v31_v10 = vperm.slane %v28_v8, 1  ;;  %v39_v14 = vld [vmem:[%s120_s2] ss:$8 sm:$0x3] }
   0x4   :  { %17 = vmax.xlane.f32.xlu0 %v16_v2  ;;  %v41_v18 = vperm.slane %v39_v14, 0  ;;  %v42_v19 = vperm.slane %v39_v14, 1 }
  0x77   :  { %v18_v3 = vpop.xlane.xlu0 %17 }
  0x78   :  { %v19_v4 = vsub.f32 %v14_v0, %v18_v3  ;;  %v20_v5 = vsub.f32 %v15_v1, %v18_v3 }
  0x7a   :  { %v21_v6 = vmul.f32 1.442695, %v19_v4  ;;  %v23_v7 = vmul.f32 1.442695, %v20_v5 }
  0x7c   :  { %74 = vpow2.f32 %v21_v6 }
  0x7d   :  { %76 = vpow2.f32 %v23_v7 }
  0x82   :  { %v75_v11 = vpop.eup %74 }
  0x83   :  { %v77_v12 = vpop.eup %76  ;;  %v34_v13 = vmul.f32 %v75_v11, %v30_v9  ;;  %v45_v20 = vmul.f32 %v75_v11, %v41_v18 }
  0x84   :  { %v25_v15 = vadd.f32 %v77_v12, %v75_v11  ;;  %v35_v16 = vmul.f32 %v77_v12, %v31_v10  ;;  %v46_v21 = vmul.f32 %v77_v12, %v42_v19 }
  0x86   :  { %26 = vadd.xlane.f32.xlu0 %v25_v15  ;;  %v36_v17 = vadd.f32 %v35_v16, %v34_v13  ;;  %v47_v22 = vadd.f32 %v46_v21, %v45_v20 }
  0x88   :  { %37 = vadd.xlane.f32.xlu1 %v36_v17 }
  0x90   :  { %48 = vadd.xlane.f32.xlu1 %v47_v22 }
  0xf9   :  { %v27_v23 = vpop.xlane.xlu0 %26 }
  0xfa   :  { %78 = vrcp.f32 %v27_v23  ;;  %v61_v28 = vand.u32 2147483648, %v27_v23  ;;  %v59_v30 = vand.u32 2147483647, %v27_v23  ;;  %vm55_vm1 = vweird.f32 %v27_v23 }
  0xfb   :  { %v38_v25 = vpop.xlane.xlu1 %37 }
  0xfc   :  { %v62_v32 = vor.u32 1.1754944e-38, %v61_v28  ;;  %vm60_vm3 = vcmp.eq.f32.partialorder %v59_v30, 8.507059e+37 }
 0x100   :  { %v79_v24 = vpop.eup %78 }
 0x101   :  { %v51_v26 = vmul.f32 %v79_v24, %v27_v23  ;;  %vm56_vm0 = vweird.f32 %v79_v24 }
 0x102   :  { %vm57_vm2 = vmor %vm55_vm1, %vm56_vm0 }
 0x103   :  { %v52_v27 = vsub.f32 1.0, %v51_v26  ;;  %v49_v35 = vpop.xlane.xlu1 %48 }
 0x105   :  { %v53_v29 = vmul.f32 %v79_v24, %v52_v27 }
 0x107   :  { %v54_v31 = vadd.f32 %v79_v24, %v53_v29 }
 0x109   :  { %v58_v33 = vsel %vm57_vm2, %v79_v24, %v54_v31 }
 0x10a   :  { %v63_v34 = vsel %vm60_vm3, %v62_v32, %v58_v33 }
 0x10b   :  { %v64_v36 = vmul.f32 %v63_v34, %v38_v25  ;;  %v67_v37 = vmul.f32 %v63_v34, %v49_v35 }
 0x10d   :  { %66 = vst.msk [vmem:[%s121_s3] sm:$0xff] %vm65_vm4, %v64_v36 }
 0x10e   :  { %69 = vst.msk [vmem:[%s121_s3] sm:$0xff] %vm68_vm5, %v67_v37 }

</bundles_post_ra>
